<compile_context>
chip_gen: v5e
topology: v5e:2x2
jax: 0.10.0
libtpu: 0.0.40
codegen_flags: <defaults>
</compile_context>

<pallas_src>
import functools

import jax
import jax.numpy as jnp
from jax.experimental import pallas as pl
from jax.experimental.pallas import tpu as pltpu


def _round_up(x, m):
    return ((x + m - 1) // m) * m


def _mlp_chain_kernel(x_ref, *rest):
    """rest = (w0, b0, w1, b1, ..., out_ref). All layers fused in one kernel."""
    out_ref = rest[-1]
    param_refs = rest[:-1]
    h = x_ref[...]
    for i in range(0, len(param_refs), 2):
        w = param_refs[i][...]          # (d_in_pad, d_out_pad)
        b = param_refs[i + 1][...]      # (1, d_out_pad)
        h = jnp.dot(h, w, preferred_element_type=jnp.float32) + b
    out_ref[...] = h.astype(out_ref.dtype)


def mlp_chain(x, weights, biases, *, bm=128):
    """Apply a chain of Linear layers (x @ W_i + b_i) inside one pallas_call.

    x: (B, d0) float32
    weights[i]: (d_i_pad, d_{i+1}_pad)  -- already (in, out) and lane-padded to 128
    biases[i]:  (1, d_{i+1}_pad)
    Returns the lane-padded output (B_pad, d_out_pad); caller slices.
    """
    B, d0 = x.shape
    d0_pad = weights[0].shape[0]
    d_out_pad = weights[-1].shape[1]

    # Batch tile: 128 rows fills the MXU M-dimension; for small batches use the
    # batch itself rounded up to the 8-sublane granule (single grid step).
    bm = min(bm, _round_up(B, 8))
    B_pad = _round_up(B, bm)

    # Zero-pad input rows (ragged batch) and columns (lane density).
    x_pad = jnp.pad(x, ((0, B_pad - B), (0, d0_pad - d0)))

    in_specs = [pl.BlockSpec((bm, d0_pad), lambda i: (i, 0))]
    params = []
    for w, b in zip(weights, biases):
        # Constant index_map -> weights/biases fetched once, VMEM-resident.
        in_specs.append(pl.BlockSpec(w.shape, lambda i: (0, 0)))
        in_specs.append(pl.BlockSpec(b.shape, lambda i: (0, 0)))
        params.extend([w, b])

    out_spec = pl.BlockSpec((bm, d_out_pad), lambda i: (i, 0))
    grid = (B_pad // bm,)

    # Advisory cost estimate for XLA scheduling.
    param_bytes = sum(int(p.size) * 4 for p in params)
    flops = 2 * B_pad * sum(int(w.shape[0]) * int(w.shape[1]) for w in weights)
    bytes_accessed = B_pad * (d0_pad + d_out_pad) * 4 + param_bytes
    cost = pl.CostEstimate(flops=flops, transcendentals=0,
                           bytes_accessed=bytes_accessed)

    # VMEM budget: resident params (double-buffered by default) + streamed
    # x/out tiles (double-buffered) + margin; never below the default scoped
    # limit, never above v7x's 64 MiB physical VMEM.
    act_bytes = bm * (d0_pad + d_out_pad) * 4
    budget = 2 * param_bytes + 4 * act_bytes + (8 << 20)
    vmem_limit = min(max(budget, 32 << 20), 64 << 20)

    out_pad = pl.pallas_call(
        _mlp_chain_kernel,
        out_shape=jax.ShapeDtypeStruct((B_pad, d_out_pad), x.dtype),
        grid_spec=pltpu.PrefetchScalarGridSpec(
            num_scalar_prefetch=0,
            grid=grid,
            in_specs=in_specs,
            out_specs=out_spec,
        ),
        compiler_params=pltpu.CompilerParams(
            dimension_semantics=("parallel",),
            vmem_limit_bytes=vmem_limit),
        cost_estimate=cost,
    )(x_pad, *params)
    return out_pad


def init_linear_params(key, in_dim, out_dim):
    """Mimic torch.nn.Linear default init: U(-1/sqrt(in), 1/sqrt(in))."""
    kw, kb = jax.random.split(key)
    bound = 1.0 / jnp.sqrt(jnp.float32(in_dim))
    # Stored directly in (in, out) layout (== W.T of the torch (out, in) weight).
    w = jax.random.uniform(kw, (in_dim, out_dim), jnp.float32, -bound, bound)
    b = jax.random.uniform(kb, (1, out_dim), jnp.float32, -bound, bound)
    return w, b


class DenseAutoencoderPallas:
    """input_dim -> hidden_dims -> latent_dim -> reversed(hidden_dims) -> input_dim."""

    def __init__(self, input_dim, hidden_dims, latent_dim, key):
        enc_dims = [input_dim] + list(hidden_dims) + [latent_dim]
        dec_dims = [latent_dim] + list(hidden_dims[::-1]) + [input_dim]
        all_dims = list(zip(enc_dims[:-1], enc_dims[1:])) + \
                   list(zip(dec_dims[:-1], dec_dims[1:]))
        keys = jax.random.split(key, len(all_dims))

        self.input_dim = input_dim
        self.output_dim = input_dim
        self.weights = []       # logical (unpadded) params, (in, out)
        self.biases = []
        self.weights_pad = []   # lane-padded params fed to the kernel
        self.biases_pad = []
        for k, (din, dout) in zip(keys, all_dims):
            w, b = init_linear_params(k, din, dout)
            self.weights.append(w)
            self.biases.append(b)
            din_p, dout_p = _round_up(din, 128), _round_up(dout, 128)
            w_p = jnp.pad(w, ((0, din_p - din), (0, dout_p - dout)))
            b_p = jnp.pad(b, ((0, 0), (0, dout_p - dout)))
            self.weights_pad.append(w_p)
            self.biases_pad.append(b_p)

    @functools.partial(jax.jit, static_argnums=0)
    def __call__(self, x):
        # Encoder + decoder are a single chain of Linears (no activations),
        # fused into one Pallas kernel operating on lane-padded tiles.
        B = x.shape[0]
        out_pad = mlp_chain(x, self.weights_pad, self.biases_pad, bm=128)
        return out_pad[:B, :self.output_dim]

    def reference(self, x):
        h = x
        for w, b in zip(self.weights, self.biases):
            h = h @ w + b
        return h


if __name__ == "__main__":
    key = jax.random.PRNGKey(0)
    k_param, k_x = jax.random.split(key)

    input_dim = 64
    hidden_dims = [32, 16]
    latent_dim = 8
    batch = 16

    model = DenseAutoencoderPallas(input_dim, hidden_dims, latent_dim, k_param)
    x = jax.random.normal(k_x, (batch, input_dim), jnp.float32)

    out = model(x)
    out = jax.block_until_ready(out)

    ref = model.reference(x)
    assert out.shape == (batch, input_dim), out.shape
    assert jnp.allclose(out, ref, atol=1e-4, rtol=1e-4), \
        float(jnp.max(jnp.abs(out - ref)))

    print("KERNEL_OK")
</pallas_src>

<mosaic_0001>
module attributes {stable_mosaic.version = 11 : i64} {
  func.func @_mlp_chain_kernel(%arg0: i32, %arg1: memref<16x128xf32, #tpu.memory_space<vmem>>, %arg2: memref<128x128xf32, #tpu.memory_space<vmem>>, %arg3: memref<1x128xf32, #tpu.memory_space<vmem>>, %arg4: memref<128x128xf32, #tpu.memory_space<vmem>>, %arg5: memref<1x128xf32, #tpu.memory_space<vmem>>, %arg6: memref<128x128xf32, #tpu.memory_space<vmem>>, %arg7: memref<1x128xf32, #tpu.memory_space<vmem>>, %arg8: memref<128x128xf32, #tpu.memory_space<vmem>>, %arg9: memref<1x128xf32, #tpu.memory_space<vmem>>, %arg10: memref<128x128xf32, #tpu.memory_space<vmem>>, %arg11: memref<1x128xf32, #tpu.memory_space<vmem>>, %arg12: memref<128x128xf32, #tpu.memory_space<vmem>>, %arg13: memref<1x128xf32, #tpu.memory_space<vmem>>, %arg14: memref<16x128xf32, #tpu.memory_space<vmem>>) attributes {dimension_semantics = [#tpu.dimension_semantics<parallel>], iteration_bounds = array<i64: 1>, scalar_prefetch = 0 : i64, scratch_operands = 0 : i64, tpu.core_type = #tpu.core_type<tc>, window_params = [{transform_indices = @transform_0, window_bounds = array<i64: 16, 128>}, {pipeline_mode = #tpu.pipeline_mode<synchronous>, transform_indices = @transform_1, window_bounds = array<i64: 128, 128>}, {pipeline_mode = #tpu.pipeline_mode<synchronous>, transform_indices = @transform_2, window_bounds = array<i64: 1, 128>}, {pipeline_mode = #tpu.pipeline_mode<synchronous>, transform_indices = @transform_3, window_bounds = array<i64: 128, 128>}, {pipeline_mode = #tpu.pipeline_mode<synchronous>, transform_indices = @transform_4, window_bounds = array<i64: 1, 128>}, {pipeline_mode = #tpu.pipeline_mode<synchronous>, transform_indices = @transform_5, window_bounds = array<i64: 128, 128>}, {pipeline_mode = #tpu.pipeline_mode<synchronous>, transform_indices = @transform_6, window_bounds = array<i64: 1, 128>}, {pipeline_mode = #tpu.pipeline_mode<synchronous>, transform_indices = @transform_7, window_bounds = array<i64: 128, 128>}, {pipeline_mode = #tpu.pipeline_mode<synchronous>, transform_indices = @transform_8, window_bounds = array<i64: 1, 128>}, {pipeline_mode = #tpu.pipeline_mode<synchronous>, transform_indices = @transform_9, window_bounds = array<i64: 128, 128>}, {pipeline_mode = #tpu.pipeline_mode<synchronous>, transform_indices = @transform_10, window_bounds = array<i64: 1, 128>}, {pipeline_mode = #tpu.pipeline_mode<synchronous>, transform_indices = @transform_11, window_bounds = array<i64: 128, 128>}, {pipeline_mode = #tpu.pipeline_mode<synchronous>, transform_indices = @transform_12, window_bounds = array<i64: 1, 128>}, {transform_indices = @transform_13, window_bounds = array<i64: 16, 128>}]} {
    %c0 = arith.constant 0 : index
    %c0_0 = arith.constant 0 : index
    %0 = vector.load %arg1[%c0, %c0_0] : memref<16x128xf32, #tpu.memory_space<vmem>>, vector<16x128xf32>
    %c0_1 = arith.constant 0 : index
    %c0_2 = arith.constant 0 : index
    %1 = vector.load %arg2[%c0_1, %c0_2] : memref<128x128xf32, #tpu.memory_space<vmem>>, vector<128x128xf32>
    %c0_3 = arith.constant 0 : index
    %c0_4 = arith.constant 0 : index
    %2 = vector.load %arg3[%c0_3, %c0_4] : memref<1x128xf32, #tpu.memory_space<vmem>>, vector<1x128xf32>
    %cst = arith.constant dense<0.000000e+00> : vector<16x128xf32>
    %3 = tpu.matmul %0, %1, %cst {dimension_numbers = #tpu.dot_dimension_numbers<[1], [0], [0], [1], [0, 0, 1, 1], [], []>} : vector<16x128xf32>, vector<128x128xf32>, vector<16x128xf32> -> vector<16x128xf32>
    %4 = vector.broadcast %2 : vector<1x128xf32> to vector<16x128xf32>
    %5 = arith.addf %3, %4 : vector<16x128xf32>
    %c0_5 = arith.constant 0 : index
    %c0_6 = arith.constant 0 : index
    %6 = vector.load %arg4[%c0_5, %c0_6] : memref<128x128xf32, #tpu.memory_space<vmem>>, vector<128x128xf32>
    %c0_7 = arith.constant 0 : index
    %c0_8 = arith.constant 0 : index
    %7 = vector.load %arg5[%c0_7, %c0_8] : memref<1x128xf32, #tpu.memory_space<vmem>>, vector<1x128xf32>
    %cst_9 = arith.constant dense<0.000000e+00> : vector<16x128xf32>
    %8 = tpu.matmul %5, %6, %cst_9 {dimension_numbers = #tpu.dot_dimension_numbers<[1], [0], [0], [1], [0, 0, 1, 1], [], []>} : vector<16x128xf32>, vector<128x128xf32>, vector<16x128xf32> -> vector<16x128xf32>
    %9 = vector.broadcast %7 : vector<1x128xf32> to vector<16x128xf32>
    %10 = arith.addf %8, %9 : vector<16x128xf32>
    %c0_10 = arith.constant 0 : index
    %c0_11 = arith.constant 0 : index
    %11 = vector.load %arg6[%c0_10, %c0_11] : memref<128x128xf32, #tpu.memory_space<vmem>>, vector<128x128xf32>
    %c0_12 = arith.constant 0 : index
    %c0_13 = arith.constant 0 : index
    %12 = vector.load %arg7[%c0_12, %c0_13] : memref<1x128xf32, #tpu.memory_space<vmem>>, vector<1x128xf32>
    %cst_14 = arith.constant dense<0.000000e+00> : vector<16x128xf32>
    %13 = tpu.matmul %10, %11, %cst_14 {dimension_numbers = #tpu.dot_dimension_numbers<[1], [0], [0], [1], [0, 0, 1, 1], [], []>} : vector<16x128xf32>, vector<128x128xf32>, vector<16x128xf32> -> vector<16x128xf32>
    %14 = vector.broadcast %12 : vector<1x128xf32> to vector<16x128xf32>
    %15 = arith.addf %13, %14 : vector<16x128xf32>
    %c0_15 = arith.constant 0 : index
    %c0_16 = arith.constant 0 : index
    %16 = vector.load %arg8[%c0_15, %c0_16] : memref<128x128xf32, #tpu.memory_space<vmem>>, vector<128x128xf32>
    %c0_17 = arith.constant 0 : index
    %c0_18 = arith.constant 0 : index
    %17 = vector.load %arg9[%c0_17, %c0_18] : memref<1x128xf32, #tpu.memory_space<vmem>>, vector<1x128xf32>
    %cst_19 = arith.constant dense<0.000000e+00> : vector<16x128xf32>
    %18 = tpu.matmul %15, %16, %cst_19 {dimension_numbers = #tpu.dot_dimension_numbers<[1], [0], [0], [1], [0, 0, 1, 1], [], []>} : vector<16x128xf32>, vector<128x128xf32>, vector<16x128xf32> -> vector<16x128xf32>
    %19 = vector.broadcast %17 : vector<1x128xf32> to vector<16x128xf32>
    %20 = arith.addf %18, %19 : vector<16x128xf32>
    %c0_20 = arith.constant 0 : index
    %c0_21 = arith.constant 0 : index
    %21 = vector.load %arg10[%c0_20, %c0_21] : memref<128x128xf32, #tpu.memory_space<vmem>>, vector<128x128xf32>
    %c0_22 = arith.constant 0 : index
    %c0_23 = arith.constant 0 : index
    %22 = vector.load %arg11[%c0_22, %c0_23] : memref<1x128xf32, #tpu.memory_space<vmem>>, vector<1x128xf32>
    %cst_24 = arith.constant dense<0.000000e+00> : vector<16x128xf32>
    %23 = tpu.matmul %20, %21, %cst_24 {dimension_numbers = #tpu.dot_dimension_numbers<[1], [0], [0], [1], [0, 0, 1, 1], [], []>} : vector<16x128xf32>, vector<128x128xf32>, vector<16x128xf32> -> vector<16x128xf32>
    %24 = vector.broadcast %22 : vector<1x128xf32> to vector<16x128xf32>
    %25 = arith.addf %23, %24 : vector<16x128xf32>
    %c0_25 = arith.constant 0 : index
    %c0_26 = arith.constant 0 : index
    %26 = vector.load %arg12[%c0_25, %c0_26] : memref<128x128xf32, #tpu.memory_space<vmem>>, vector<128x128xf32>
    %c0_27 = arith.constant 0 : index
    %c0_28 = arith.constant 0 : index
    %27 = vector.load %arg13[%c0_27, %c0_28] : memref<1x128xf32, #tpu.memory_space<vmem>>, vector<1x128xf32>
    %cst_29 = arith.constant dense<0.000000e+00> : vector<16x128xf32>
    %28 = tpu.matmul %25, %26, %cst_29 {dimension_numbers = #tpu.dot_dimension_numbers<[1], [0], [0], [1], [0, 0, 1, 1], [], []>} : vector<16x128xf32>, vector<128x128xf32>, vector<16x128xf32> -> vector<16x128xf32>
    %29 = vector.broadcast %27 : vector<1x128xf32> to vector<16x128xf32>
    %30 = arith.addf %28, %29 : vector<16x128xf32>
    %c0_30 = arith.constant 0 : index
    %c0_31 = arith.constant 0 : index
    %31 = vector.load %arg14[%c0_30, %c0_31] : memref<16x128xf32, #tpu.memory_space<vmem>>, vector<16x128xf32>
    tpu.vector_store %arg14[%c0_30, %c0_31], %30 {strides = array<i32>} : memref<16x128xf32, #tpu.memory_space<vmem>>, vector<16x128xf32>,
    return
  }
  func.func @transform_0(%arg0: i32) -> (i32, i32) {
    %c0_i32 = arith.constant 0 : i32
    %c0_i32_0 = arith.constant 0 : i32
    return %arg0, %c0_i32 : i32, i32
  }
  func.func @transform_1(%arg0: i32) -> (i32, i32) {
    %c0_i32 = arith.constant 0 : i32
    %c0_i32_0 = arith.constant 0 : i32
    %c0_i32_1 = arith.constant 0 : i32
    return %c0_i32, %c0_i32_0 : i32, i32
  }
  func.func @transform_2(%arg0: i32) -> (i32, i32) {
    %c0_i32 = arith.constant 0 : i32
    %c0_i32_0 = arith.constant 0 : i32
    %c0_i32_1 = arith.constant 0 : i32
    return %c0_i32, %c0_i32_0 : i32, i32
  }
  func.func @transform_3(%arg0: i32) -> (i32, i32) {
    %c0_i32 = arith.constant 0 : i32
    %c0_i32_0 = arith.constant 0 : i32
    %c0_i32_1 = arith.constant 0 : i32
    return %c0_i32, %c0_i32_0 : i32, i32
  }
  func.func @transform_4(%arg0: i32) -> (i32, i32) {
    %c0_i32 = arith.constant 0 : i32
    %c0_i32_0 = arith.constant 0 : i32
    %c0_i32_1 = arith.constant 0 : i32
    return %c0_i32, %c0_i32_0 : i32, i32
  }
  func.func @transform_5(%arg0: i32) -> (i32, i32) {
    %c0_i32 = arith.constant 0 : i32
    %c0_i32_0 = arith.constant 0 : i32
    %c0_i32_1 = arith.constant 0 : i32
    return %c0_i32, %c0_i32_0 : i32, i32
  }
  func.func @transform_6(%arg0: i32) -> (i32, i32) {
    %c0_i32 = arith.constant 0 : i32
    %c0_i32_0 = arith.constant 0 : i32
    %c0_i32_1 = arith.constant 0 : i32
    return %c0_i32, %c0_i32_0 : i32, i32
  }
  func.func @transform_7(%arg0: i32) -> (i32, i32) {
    %c0_i32 = arith.constant 0 : i32
    %c0_i32_0 = arith.constant 0 : i32
    %c0_i32_1 = arith.constant 0 : i32
    return %c0_i32, %c0_i32_0 : i32, i32
  }
  func.func @transform_8(%arg0: i32) -> (i32, i32) {
    %c0_i32 = arith.constant 0 : i32
    %c0_i32_0 = arith.constant 0 : i32
    %c0_i32_1 = arith.constant 0 : i32
    return %c0_i32, %c0_i32_0 : i32, i32
  }
  func.func @transform_9(%arg0: i32) -> (i32, i32) {
    %c0_i32 = arith.constant 0 : i32
    %c0_i32_0 = arith.constant 0 : i32
    %c0_i32_1 = arith.constant 0 : i32
    return %c0_i32, %c0_i32_0 : i32, i32
  }
  func.func @transform_10(%arg0: i32) -> (i32, i32) {
    %c0_i32 = arith.constant 0 : i32
    %c0_i32_0 = arith.constant 0 : i32
    %c0_i32_1 = arith.constant 0 : i32
    return %c0_i32, %c0_i32_0 : i32, i32
  }
  func.func @transform_11(%arg0: i32) -> (i32, i32) {
    %c0_i32 = arith.constant 0 : i32
    %c0_i32_0 = arith.constant 0 : i32
    %c0_i32_1 = arith.constant 0 : i32
    return %c0_i32, %c0_i32_0 : i32, i32
  }
  func.func @transform_12(%arg0: i32) -> (i32, i32) {
    %c0_i32 = arith.constant 0 : i32
    %c0_i32_0 = arith.constant 0 : i32
    %c0_i32_1 = arith.constant 0 : i32
    return %c0_i32, %c0_i32_0 : i32, i32
  }
  func.func @transform_13(%arg0: i32) -> (i32, i32) {
    %c0_i32 = arith.constant 0 : i32
    %c0_i32_0 = arith.constant 0 : i32
    return %arg0, %c0_i32 : i32, i32
  }
}

</mosaic_0001>

<bundles_post_ra>
// kernel: a_call__.1
= control target key start
LH: loop header
LB: loop body
LE: loop exit
PB: predicated region body
PF: predicated region fallthrough
CT: control target
= control target key end

     0   :  { %18 = vsyncpa [#allocation3], 0  ;;  %s793_s0 = inlined_call_operand.vmem [shape: f32[16,128], index: 0, kind: input, shape index: {}]   ;;  %s794_s1 = inlined_call_operand.hbm [shape: f32[128,128], index: 1, kind: input, shape index: {}]   ;;  %s795_s2 = inlined_call_operand.vmem [shape: f32[1,128], index: 2, kind: input, shape index: {}]   ;;  %s796_s3 = inlined_call_operand.hbm [shape: f32[128,128], index: 3, kind: input, shape index: {}]   ;;  %s797_s4 = inlined_call_operand.vmem [shape: f32[1,128], index: 4, kind: input, shape index: {}]   ;;  %s798_s5 = inlined_call_operand.hbm [shape: f32[128,128], index: 5, kind: input, shape index: {}]   ;;  %s799_s6 = inlined_call_operand.vmem [shape: f32[1,128], index: 6, kind: input, shape index: {}]   ;;  %s800_s7 = inlined_call_operand.hbm [shape: f32[128,128], index: 7, kind: input, shape index: {}]   ;;  %s801_s8 = inlined_call_operand.vmem [shape: f32[1,128], index: 8, kind: input, shape index: {}]   ;;  %s802_s9 = inlined_call_operand.hbm [shape: f32[128,128], index: 9, kind: input, shape index: {}]   ;;  %s803_s10 = inlined_call_operand.vmem [shape: f32[1,128], index: 10, kind: input, shape index: {}]   ;;  %s804_s11 = inlined_call_operand.hbm [shape: f32[128,128], index: 11, kind: input, shape index: {}]   ;;  %s805_s12 = inlined_call_operand.vmem [shape: f32[1,128], index: 12, kind: input, shape index: {}]   ;;  %s806_s13 = inlined_call_operand.hbm [shape: f32[16,128], index: 13, kind: output, shape index: {}]  }
   0x1   :  { %19 = vsyncpa [#allocation6], 0 }
   0x2   :  { %20 = vsyncpa [#allocation9], 0 }
   0x3   :  { %21 = vsyncpa [#allocation12], 0 }
   0x4   :  { %22 = vsyncpa [#allocation4], 0  ;;  %s44_s27 = sshll.u32 %s796_s3, 4  ;;  %s648_s28 = smov [#allocation5]   ;;  %s45_s27 = int_to_ptr.hbm [resolvable:$true] %s44_s27 }
   0x5   :  { %s46_s29 = sshll.u32 %s648_s28, 4  ;;  %s74_s15 = sshll.u32 %s800_s7, 4  ;;  %s47_s29 = int_to_ptr.vmem [resolvable:$true] %s46_s29  ;;  %s75_s15 = int_to_ptr.hbm [resolvable:$true] %s74_s15 }
   0x6   :  { %s649_s16 = smov 128   ;;  %s650_s17 = smov 8  }
   0x7   :  { %52 = dma.hbm_to_vmem [thread:$0]  %s45_s27, 2048, %s47_s29, [#allocation6], %s649_s16, %s649_s16, %s650_s17  }
   0x8   :  { %s651_s18 = smov [#allocation8]   ;;  %s29_s3 = sshll.u32 %s794_s1, 4  ;;  %s30_s3 = int_to_ptr.hbm [resolvable:$true] %s29_s3 }
   0x9   :  { %s76_s19 = sshll.u32 %s651_s18, 4  ;;  %s59_s23 = sshll.u32 %s798_s5, 4  ;;  %s77_s19 = int_to_ptr.vmem [resolvable:$true] %s76_s19  ;;  %s60_s23 = int_to_ptr.hbm [resolvable:$true] %s59_s23 }
   0xa   :  { %82 = dma.hbm_to_vmem [thread:$0]  %s75_s15, 2048, %s77_s19, [#allocation9], %s649_s16, %s649_s16, %s650_s17  }
   0xb   :  { %s652_s24 = smov [#allocation2]   ;;  %s653_s26 = smov [#allocation7]  }
   0xc   :  { %s31_s25 = sshll.u32 %s652_s24, 4  ;;  %s61_s1 = sshll.u32 %s653_s26, 4  ;;  %s32_s25 = int_to_ptr.vmem [resolvable:$true] %s31_s25  ;;  %s62_s1 = int_to_ptr.vmem [resolvable:$true] %s61_s1 }
   0xd   :  { %37 = dma.hbm_to_vmem [thread:$0]  %s30_s3, 2048, %s32_s25, [#allocation3], %s649_s16, %s649_s16, %s650_s17  }
   0xe   :  { %s89_s29 = sshll.u32 %s802_s9, 4  ;;  %s104_s14 = sshll.u32 %s804_s11, 4  ;;  %s90_s29 = int_to_ptr.hbm [resolvable:$true] %s89_s29  ;;  %s105_s14 = int_to_ptr.hbm [resolvable:$true] %s104_s14 }
   0xf   :  { %67 = dma.hbm_to_vmem [thread:$0]  %s60_s23, 2048, %s62_s1, [#allocation6], %s649_s16, %s649_s16, %s650_s17  }
  0x10   :  { %s654_s15 = smov [#allocation10]   ;;  %s655_s19 = smov [#allocation11]  }
  0x11   :  { %s91_s18 = sshll.u32 %s654_s15, 4  ;;  %s106_s9 = sshll.u32 %s655_s19, 4  ;;  %s92_s18 = int_to_ptr.vmem [resolvable:$true] %s91_s18  ;;  %s107_s9 = int_to_ptr.vmem [resolvable:$true] %s106_s9 }
  0x12   :  { %97 = dma.hbm_to_vmem [thread:$0]  %s90_s29, 2048, %s92_s18, [#allocation9], %s649_s16, %s649_s16, %s650_s17  }
  0x13   :  { %112 = dma.hbm_to_vmem [thread:$0]  %s105_s14, 2048, %s107_s9, [#allocation12], %s649_s16, %s649_s16, %s650_s17  }
  0x14   :  { %638 = dma.done.wait [#allocation3], 2048  }
  0x15   :  { %639 = vsyncadd [#allocation3], 4294965248 }
  0x16   :  { %640 = dma.done.wait [#allocation6], 4096  }
  0x17   :  { %641 = vsyncadd [#allocation6], 4294963200 }
  0x18   :  { %642 = dma.done.wait [#allocation9], 4096  }
  0x19   :  { %643 = vsyncadd [#allocation9], 4294963200 }
  0x1a   :  { %644 = dma.done.wait [#allocation12], 2048  }
  0x1b   :  { %645 = vsyncadd [#allocation12], 4294965248  ;;  %v156_v0 = vld [vmem:[#allocation2 + $0x78] sm:$0xff]  ;;  %v155_v1 = vld [vmem:[#allocation2 + $0x70] sm:$0xff]  ;;  %s656_s27 = smov [#allocation13]   ;;  %s407_s30 = sshll.u32 %s806_s13, 4  ;;  %s408_s30 = int_to_ptr.hbm [resolvable:$true] %s407_s30 }
  0x1c   :  { %161 = vmatpush.msra.mxu0 %v156_v0  ;;  %v154_v2 = vld [vmem:[#allocation2 + $0x68] sm:$0xff]  ;;  %v153_v3 = vld [vmem:[#allocation2 + $0x60] sm:$0xff]  ;;  %v152_v4 = vld [vmem:[#allocation2 + $0x58] sm:$0xff]  ;;  %s405_s28 = sshll.u32 %s656_s27, 4  ;;  %s406_s28 = int_to_ptr.vmem [resolvable:$true] %s405_s28 }
  0x1d   :  { %v151_v5 = vld [vmem:[#allocation2 + $0x50] sm:$0xff]  ;;  %v199_v6 = vld [vmem:[#allocation5 + $0x78] sm:$0xff]  ;;  %v150_v8 = vld [vmem:[#allocation2 + $0x48] sm:$0xff] }
  0x1e   :  { %162 = vmatpush.msra.mxu0 %v155_v1  ;;  %v198_v7 = vld [vmem:[#allocation5 + $0x70] sm:$0xff]  ;;  %204 = vmatpush.msra.mxu1 %v199_v6  ;;  %v197_v9 = vld [vmem:[#allocation5 + $0x68] sm:$0xff]  ;;  %v149_v10 = vld [vmem:[#allocation2 + $0x40] sm:$0xff] }
  0x1f   :  { %v196_v11 = vld [vmem:[#allocation5 + $0x60] sm:$0xff]  ;;  %v148_v12 = vld [vmem:[#allocation2 + $0x38] sm:$0xff]  ;;  %v147_v14 = vld [vmem:[#allocation2 + $0x30] sm:$0xff] }
  0x20   :  { %163 = vmatpush.msra.mxu0 %v154_v2  ;;  %205 = vmatpush.msra.mxu1 %v198_v7  ;;  %v195_v13 = vld [vmem:[#allocation5 + $0x58] sm:$0xff]  ;;  %v194_v15 = vld [vmem:[#allocation5 + $0x50] sm:$0xff]  ;;  %v146_v16 = vld [vmem:[#allocation2 + $0x28] sm:$0xff] }
  0x21   :  { %v193_v17 = vld [vmem:[#allocation5 + $0x48] sm:$0xff]  ;;  %v145_v18 = vld [vmem:[#allocation2 + $0x20] sm:$0xff]  ;;  %v144_v20 = vld [vmem:[#allocation2 + $0x18] sm:$0xff] }
  0x22   :  { %164 = vmatpush.msra.mxu0 %v153_v3  ;;  %206 = vmatpush.msra.mxu1 %v197_v9  ;;  %v192_v19 = vld [vmem:[#allocation5 + $0x40] sm:$0xff]  ;;  %v191_v21 = vld [vmem:[#allocation5 + $0x38] sm:$0xff]  ;;  %v143_v22 = vld [vmem:[#allocation2 + $0x10] sm:$0xff] }
  0x23   :  { %v190_v23 = vld [vmem:[#allocation5 + $0x30] sm:$0xff]  ;;  %v142_v24 = vld [vmem:[#allocation2 + $0x8] sm:$0xff]  ;;  %v141_v26 = vld [vmem:[#allocation2] sm:$0xff] }
  0x24   :  { %165 = vmatpush.msra.mxu0 %v152_v4  ;;  %207 = vmatpush.msra.mxu1 %v196_v11  ;;  %v189_v25 = vld [vmem:[#allocation5 + $0x28] sm:$0xff]  ;;  %v188_v27 = vld [vmem:[#allocation5 + $0x20] sm:$0xff]  ;;  %v187_v29 = vld [vmem:[#allocation5 + $0x18] sm:$0xff] }
  0x25   :  { %v139_v28 = vld [vmem:[%s793_s0] sm:$0xff]  ;;  %v186_v30 = vld [vmem:[#allocation5 + $0x10] sm:$0xff]  ;;  %v140_v31 = vld [vmem:[%s793_s0 + $0x8] sm:$0xff] }
  0x26   :  { %166 = vmatpush.msra.mxu0 %v151_v5  ;;  %208 = vmatpush.msra.mxu1 %v195_v13  ;;  %v185_v32 = vld [vmem:[#allocation5 + $0x8] sm:$0xff]  ;;  %v184_v33 = vld [vmem:[#allocation5] sm:$0xff]  ;;  %v242_v34 = vld [vmem:[#allocation7 + $0x78] sm:$0xff] }
  0x27   :  { %v241_v35 = vld [vmem:[#allocation7 + $0x70] sm:$0xff]  ;;  %247 = vmatpush.msra.mxu2 %v242_v34  ;;  %v240_v36 = vld [vmem:[#allocation7 + $0x68] sm:$0xff]  ;;  %v239_v37 = vld [vmem:[#allocation7 + $0x60] sm:$0xff] }
  0x28   :  { %167 = vmatpush.msra.mxu0 %v150_v8  ;;  %209 = vmatpush.msra.mxu1 %v194_v15  ;;  %v238_v38 = vld [vmem:[#allocation7 + $0x58] sm:$0xff]  ;;  %v237_v39 = vld [vmem:[#allocation7 + $0x50] sm:$0xff]  ;;  %v236_v40 = vld [vmem:[#allocation7 + $0x48] sm:$0xff] }
  0x29   :  { %248 = vmatpush.msra.mxu2 %v241_v35  ;;  %v235_v41 = vld [vmem:[#allocation7 + $0x40] sm:$0xff]  ;;  %v234_v42 = vld [vmem:[#allocation7 + $0x38] sm:$0xff]  ;;  %v233_v43 = vld [vmem:[#allocation7 + $0x30] sm:$0xff] }
  0x2a   :  { %168 = vmatpush.msra.mxu0 %v149_v10  ;;  %210 = vmatpush.msra.mxu1 %v193_v17  ;;  %v464_v44 = vld [vmem:[%s795_s2] ss:$0 sm:$0xff]  ;;  %v232_v45 = vld [vmem:[#allocation7 + $0x28] sm:$0xff]  ;;  %v230_v49 = vld [vmem:[#allocation7 + $0x18] sm:$0xff] }
  0x2b   :  { %249 = vmatpush.msra.mxu2 %v240_v36  ;;  %v231_v46 = vld [vmem:[#allocation7 + $0x20] sm:$0xff]  ;;  %v229_v50 = vld [vmem:[#allocation7 + $0x10] sm:$0xff]  ;;  %v228_v53 = vld [vmem:[#allocation7 + $0x8] sm:$0xff] }
  0x2c   :  { %169 = vmatpush.msra.mxu0 %v148_v12  ;;  %211 = vmatpush.msra.mxu1 %v192_v19  ;;  %v227_v54 = vld [vmem:[#allocation7] sm:$0xff]  ;;  %v285_v55 = vld [vmem:[#allocation8 + $0x78] sm:$0xff]  ;;  %v284_v56 = vld [vmem:[#allocation8 + $0x70] sm:$0xff] }
  0x2d   :  { %250 = vmatpush.msra.mxu2 %v239_v37  ;;  %290 = vmatpush.msra.mxu3 %v285_v55  ;;  %v283_v57 = vld [vmem:[#allocation8 + $0x68] sm:$0xff]  ;;  %v282_v58 = vld [vmem:[#allocation8 + $0x60] sm:$0xff]  ;;  %v281_v59 = vld [vmem:[#allocation8 + $0x58] sm:$0xff] }
  0x2e   :  { %170 = vmatpush.msra.mxu0 %v147_v14  ;;  %212 = vmatpush.msra.mxu1 %v191_v21  ;;  %v280_v60 = vld [vmem:[#allocation8 + $0x50] sm:$0xff]  ;;  %v279_v61 = vld [vmem:[#allocation8 + $0x48] sm:$0xff]  ;;  %v278_v62 = vld [vmem:[#allocation8 + $0x40] sm:$0xff] }
  0x2f   :  { %251 = vmatpush.msra.mxu2 %v238_v38  ;;  %291 = vmatpush.msra.mxu3 %v284_v56  ;;  %v277_v63 = vld [vmem:[#allocation8 + $0x38] sm:$0xff]  ;;  %v276_v0 = vld [vmem:[#allocation8 + $0x30] sm:$0xff]  ;;  %v465_v1 = vld [vmem:[%s797_s4] ss:$0 sm:$0xff] }
  0x30   :  { %171 = vmatpush.msra.mxu0 %v146_v16  ;;  %213 = vmatpush.msra.mxu1 %v190_v23  ;;  %v275_v2 = vld [vmem:[#allocation8 + $0x28] sm:$0xff]  ;;  %v274_v3 = vld [vmem:[#allocation8 + $0x20] sm:$0xff]  ;;  %v273_v6 = vld [vmem:[#allocation8 + $0x18] sm:$0xff] }
  0x31   :  { %252 = vmatpush.msra.mxu2 %v237_v39  ;;  %292 = vmatpush.msra.mxu3 %v283_v57  ;;  %v272_v7 = vld [vmem:[#allocation8 + $0x10] sm:$0xff]  ;;  %v271_v10 = vld [vmem:[#allocation8 + $0x8] sm:$0xff]  ;;  %v270_v11 = vld [vmem:[#allocation8] sm:$0xff] }
  0x32   :  { %172 = vmatpush.msra.mxu0 %v145_v18  ;;  %214 = vmatpush.msra.mxu1 %v189_v25  ;;  %v328_v12 = vld [vmem:[#allocation10 + $0x78] sm:$0xff]  ;;  %v327_v13 = vld [vmem:[#allocation10 + $0x70] sm:$0xff]  ;;  %v326_v14 = vld [vmem:[#allocation10 + $0x68] sm:$0xff] }
  0x33   :  { %253 = vmatpush.msra.mxu2 %v236_v40  ;;  %293 = vmatpush.msra.mxu3 %v282_v58  ;;  %v325_v15 = vld [vmem:[#allocation10 + $0x60] sm:$0xff]  ;;  %v324_v16 = vld [vmem:[#allocation10 + $0x58] sm:$0xff]  ;;  %v323_v17 = vld [vmem:[#allocation10 + $0x50] sm:$0xff] }
  0x34   :  { %173 = vmatpush.msra.mxu0 %v144_v20  ;;  %215 = vmatpush.msra.mxu1 %v188_v27  ;;  %v322_v18 = vld [vmem:[#allocation10 + $0x48] sm:$0xff]  ;;  %v321_v19 = vld [vmem:[#allocation10 + $0x40] sm:$0xff]  ;;  %v320_v20 = vld [vmem:[#allocation10 + $0x38] sm:$0xff] }
  0x35   :  { %254 = vmatpush.msra.mxu2 %v235_v41  ;;  %294 = vmatpush.msra.mxu3 %v281_v59  ;;  %v319_v21 = vld [vmem:[#allocation10 + $0x30] sm:$0xff]  ;;  %v318_v23 = vld [vmem:[#allocation10 + $0x28] sm:$0xff]  ;;  %v316_v27 = vld [vmem:[#allocation10 + $0x18] sm:$0xff] }
  0x36   :  { %174 = vmatpush.msra.mxu0 %v143_v22  ;;  %216 = vmatpush.msra.mxu1 %v187_v29  ;;  %v466_v22 = vld [vmem:[%s799_s6] ss:$0 sm:$0xff]  ;;  %v370_v34 = vld [vmem:[#allocation11 + $0x70] sm:$0xff]  ;;  %v369_v35 = vld [vmem:[#allocation11 + $0x68] sm:$0xff] }
  0x37   :  { %255 = vmatpush.msra.mxu2 %v234_v42  ;;  %295 = vmatpush.msra.mxu3 %v280_v60  ;;  %v368_v36 = vld [vmem:[#allocation11 + $0x60] sm:$0xff]  ;;  %v367_v37 = vld [vmem:[#allocation11 + $0x58] sm:$0xff]  ;;  %v366_v38 = vld [vmem:[#allocation11 + $0x50] sm:$0xff] }
  0x38   :  { %175 = vmatpush.msra.mxu0 %v142_v24  ;;  %217 = vmatpush.msra.mxu1 %v186_v30  ;;  %v317_v24 = vld [vmem:[#allocation10 + $0x20] sm:$0xff]  ;;  %v365_v39 = vld [vmem:[#allocation11 + $0x48] sm:$0xff]  ;;  %v363_v41 = vld [vmem:[#allocation11 + $0x38] sm:$0xff] }
  0x39   :  { %256 = vmatpush.msra.mxu2 %v233_v43  ;;  %296 = vmatpush.msra.mxu3 %v279_v61  ;;  %v364_v40 = vld [vmem:[#allocation11 + $0x40] sm:$0xff]  ;;  %v362_v42 = vld [vmem:[#allocation11 + $0x30] sm:$0xff] }
  0x3a   :  { %176 = vmatpush.msra.mxu0 %v141_v26  ;;  %218 = vmatpush.msra.mxu1 %v185_v32  ;;  %v313_v32 = vld [vmem:[#allocation10] sm:$0xff] }
  0x3b   :  { %177 = vmatmul.f32.vlgmr.msra.gmra.mxu0 %v139_v28  ;;  %257 = vmatpush.msra.mxu2 %v232_v45  ;;  %v315_v28 = vld [vmem:[#allocation10 + $0x10] sm:$0xff]  ;;  %v467_v43 = vld [vmem:[%s801_s8] ss:$0 sm:$0xff] }
  0x3c   :  { %219 = vmatpush.msra.mxu1 %v184_v33  ;;  %297 = vmatpush.msra.mxu3 %v278_v62  ;;  %v371_v33 = vld [vmem:[#allocation11 + $0x78] sm:$0xff]  ;;  %v360_v45 = vld [vmem:[#allocation11 + $0x20] sm:$0xff] }
  0x3d   :  { %258 = vmatpush.msra.mxu2 %v231_v46  ;;  %333 = vmatpush.msrb.mxu0 %v328_v12  ;;  %v469_v59 = vld [vmem:[%s805_s12] ss:$0 sm:$0xff] }
  0x3e   :  { %298 = vmatpush.msra.mxu3 %v277_v63  ;;  %376 = vmatpush.msrb.mxu1 %v371_v33 }
  0x3f   :  { %259 = vmatpush.msra.mxu2 %v230_v49  ;;  %334 = vmatpush.msrb.mxu0 %v327_v13  ;;  %v358_v49 = vld [vmem:[#allocation11 + $0x10] sm:$0xff] }
  0x40   :  { %299 = vmatpush.msra.mxu3 %v276_v0  ;;  %377 = vmatpush.msrb.mxu1 %v370_v34 }
  0x41   :  { %260 = vmatpush.msra.mxu2 %v229_v50  ;;  %335 = vmatpush.msrb.mxu0 %v326_v14 }
  0x42   :  { %300 = vmatpush.msra.mxu3 %v275_v2  ;;  %378 = vmatpush.msrb.mxu1 %v369_v35 }
  0x43   :  { %180 = vmatmul.f32.gmra.mxu0 %v140_v31  ;;  %261 = vmatpush.msra.mxu2 %v228_v53  ;;  %v314_v31 = vld [vmem:[#allocation10 + $0x8] sm:$0xff]  ;;  %v356_v53 = vld [vmem:[#allocation11] sm:$0xff] }
  0x44   :  { %301 = vmatpush.msra.mxu3 %v274_v3  ;;  %336 = vmatpush.msrb.mxu0 %v325_v15 }
  0x45   :  { %262 = vmatpush.msra.mxu2 %v227_v54  ;;  %379 = vmatpush.msrb.mxu1 %v368_v36  ;;  %v468_v54 = vld [vmem:[%s803_s10] ss:$0 sm:$0xff] }
  0x46   :  { %302 = vmatpush.msra.mxu3 %v273_v6  ;;  %337 = vmatpush.msrb.mxu0 %v324_v16 }
  0x47   :  { %423 = vmatpush.msrb.mxu2 %v328_v12  ;;  %380 = vmatpush.msrb.mxu1 %v367_v37 }
  0x48   :  { %303 = vmatpush.msra.mxu3 %v272_v7  ;;  %338 = vmatpush.msrb.mxu0 %v323_v17 }
  0x49   :  { %424 = vmatpush.msrb.mxu2 %v327_v13  ;;  %381 = vmatpush.msrb.mxu1 %v366_v38 }
  0x4a   :  { %304 = vmatpush.msra.mxu3 %v271_v10  ;;  %339 = vmatpush.msrb.mxu0 %v322_v18 }
  0x4b   :  { %425 = vmatpush.msrb.mxu2 %v326_v14  ;;  %382 = vmatpush.msrb.mxu1 %v365_v39 }
  0x4c   :  { %305 = vmatpush.msra.mxu3 %v270_v11  ;;  %340 = vmatpush.msrb.mxu0 %v321_v19 }
  0x4d   :  { %426 = vmatpush.msrb.mxu2 %v325_v15  ;;  %383 = vmatpush.msrb.mxu1 %v364_v40 }
  0x4e   :  { %341 = vmatpush.msrb.mxu0 %v320_v20  ;;  %439 = vmatpush.msrb.mxu3 %v371_v33 }
  0x4f   :  { %427 = vmatpush.msrb.mxu2 %v324_v16  ;;  %384 = vmatpush.msrb.mxu1 %v363_v41 }
  0x50   :  { %342 = vmatpush.msrb.mxu0 %v319_v21  ;;  %440 = vmatpush.msrb.mxu3 %v370_v34 }
  0x51   :  { %428 = vmatpush.msrb.mxu2 %v323_v17  ;;  %385 = vmatpush.msrb.mxu1 %v362_v42 }
  0x52   :  { %343 = vmatpush.msrb.mxu0 %v318_v23  ;;  %441 = vmatpush.msrb.mxu3 %v369_v35 }
  0x53   :  { %429 = vmatpush.msrb.mxu2 %v322_v18 }
  0x54   :  { %344 = vmatpush.msrb.mxu0 %v317_v24  ;;  %442 = vmatpush.msrb.mxu3 %v368_v36 }
  0x55   :  { %430 = vmatpush.msrb.mxu2 %v321_v19 }
  0x56   :  { %345 = vmatpush.msrb.mxu0 %v316_v27  ;;  %443 = vmatpush.msrb.mxu3 %v367_v37 }
  0x57   :  { %431 = vmatpush.msrb.mxu2 %v320_v20 }
  0x58   :  { %346 = vmatpush.msrb.mxu0 %v315_v28  ;;  %444 = vmatpush.msrb.mxu3 %v366_v38 }
  0x59   :  { %432 = vmatpush.msrb.mxu2 %v319_v21 }
  0x5a   :  { %347 = vmatpush.msrb.mxu0 %v314_v31  ;;  %445 = vmatpush.msrb.mxu3 %v365_v39 }
  0x5b   :  { %433 = vmatpush.msrb.mxu2 %v318_v23 }
  0x5c   :  { %348 = vmatpush.msrb.mxu0 %v313_v32  ;;  %446 = vmatpush.msrb.mxu3 %v364_v40 }
  0x5d   :  { %434 = vmatpush.msrb.mxu2 %v317_v24 }
  0x5e   :  { %447 = vmatpush.msrb.mxu3 %v363_v41 }
  0x5f   :  { %435 = vmatpush.msrb.mxu2 %v316_v27 }
  0x60   :  { %448 = vmatpush.msrb.mxu3 %v362_v42 }
  0x61   :  { %436 = vmatpush.msrb.mxu2 %v315_v28 }
  0x63   :  { %437 = vmatpush.msrb.mxu2 %v314_v31 }
  0x65   :  { %438 = vmatpush.msrb.mxu2 %v313_v32 }
  0xb8   :  { %v178_v47 = vpop.f32.mrf.mxu0 }
  0xb9   :  { %v179_v48 = vadd.f32 %v464_v44, %v178_v47 }
  0xbb   :  { %220 = vmatmul.f32.vlgmr.msra.gmra.mxu1 %v179_v48  ;;  %v359_v48 = vld [vmem:[#allocation11 + $0x18] sm:$0xff] }
  0xc0   :  { %v181_v51 = vpop.f32.mrf.mxu0 }
  0xc1   :  { %v182_v52 = vadd.f32 %v464_v44, %v181_v51  ;;  %v361_v44 = vld [vmem:[#allocation11 + $0x28] sm:$0xff] }
  0xc2   :  { %386 = vmatpush.msrb.mxu1 %v361_v44  ;;  %449 = vmatpush.msrb.mxu3 %v361_v44 }
  0xc3   :  { %223 = vmatmul.f32.gmra.mxu1 %v182_v52  ;;  %v357_v52 = vld [vmem:[#allocation11 + $0x8] sm:$0xff] }
  0xc4   :  { %387 = vmatpush.msrb.mxu1 %v360_v45  ;;  %450 = vmatpush.msrb.mxu3 %v360_v45 }
  0xc6   :  { %388 = vmatpush.msrb.mxu1 %v359_v48  ;;  %451 = vmatpush.msrb.mxu3 %v359_v48 }
  0xc8   :  { %389 = vmatpush.msrb.mxu1 %v358_v49  ;;  %452 = vmatpush.msrb.mxu3 %v358_v49 }
  0xca   :  { %390 = vmatpush.msrb.mxu1 %v357_v52  ;;  %453 = vmatpush.msrb.mxu3 %v357_v52 }
  0xcc   :  { %391 = vmatpush.msrb.mxu1 %v356_v53  ;;  %454 = vmatpush.msrb.mxu3 %v356_v53 }
 0x138   :  { %v221_v4 = vpop.f32.mrf.mxu1 }
 0x139   :  { %v222_v5 = vadd.f32 %v465_v1, %v221_v4 }
 0x13b   :  { %263 = vmatmul.f32.vlgmr.msra.gmra.mxu2 %v222_v5 }
 0x140   :  { %v224_v8 = vpop.f32.mrf.mxu1 }
 0x141   :  { %v225_v9 = vadd.f32 %v465_v1, %v224_v8 }
 0x143   :  { %266 = vmatmul.f32.gmra.mxu2 %v225_v9 }
 0x1be   :  { %v264_v25 = vpop.f32.mrf.mxu2 }
 0x1bf   :  { %v265_v26 = vadd.f32 %v466_v22, %v264_v25 }
 0x1c1   :  { %306 = vmatmul.f32.vlgmr.msra.gmra.mxu3 %v265_v26 }
 0x1c6   :  { %v267_v29 = vpop.f32.mrf.mxu2 }
 0x1c7   :  { %v268_v30 = vadd.f32 %v466_v22, %v267_v29 }
 0x1c9   :  { %309 = vmatmul.f32.gmra.mxu3 %v268_v30 }
 0x244   :  { %v307_v46 = vpop.f32.mrf.mxu3 }
 0x245   :  { %v308_v47 = vadd.f32 %v467_v43, %v307_v46 }
 0x247   :  { %349 = vmatmul.f32.vlgmr.msrb.gmra.mxu0 %v308_v47 }
 0x24c   :  { %v310_v50 = vpop.f32.mrf.mxu3 }
 0x24d   :  { %v311_v51 = vadd.f32 %v467_v43, %v310_v50 }
 0x24f   :  { %352 = vmatmul.f32.vlgmr.msrb.gmra.mxu2 %v311_v51 }
 0x2c4   :  { %v350_v55 = vpop.f32.mrf.mxu0 }
 0x2c5   :  { %v351_v56 = vadd.f32 %v468_v54, %v350_v55 }
 0x2c7   :  { %392 = vmatmul.f32.vlgmr.msrb.gmra.mxu1 %v351_v56 }
 0x2d2   :  { %v353_v57 = vpop.f32.mrf.mxu2 }
 0x2d3   :  { %v354_v58 = vadd.f32 %v468_v54, %v353_v57 }
 0x2d5   :  { %395 = vmatmul.f32.vlgmr.msrb.gmra.mxu3 %v354_v58 }
 0x344   :  { %v393_v60 = vpop.f32.mrf.mxu1 }
 0x345   :  { %v394_v61 = vadd.f32 %v469_v59, %v393_v60 }
 0x347   :  { %399 = vst [vmem:[#allocation13] sm:$0xff] %v394_v61 }
 0x358   :  { %v396_v62 = vpop.f32.mrf.mxu3 }
 0x359   :  { %v397_v63 = vadd.f32 %v469_v59, %v396_v62 }
 0x35b   :  { %400 = vst [vmem:[#allocation13 + $0x8] sm:$0xff] %v397_v63 }
 0x35c   :  { %413 = dma.vmem_to_hbm [thread:$0]  %s406_s28, 256, %s408_s30, [#allocation4], %s649_s16, %s649_s16, %s650_s17  }
 0x35d   :  { %646 = dma.done.wait [#allocation4], 256  }
 0x35e   :  { %647 = vsyncadd [#allocation4], 4294967040 }
 0x35f   :  { %418 = vsyncpa [#allocation3], 1 }
 0x360   :  { %419 = vsyncpa [#allocation6], 1 }
 0x361   :  { %420 = vsyncpa [#allocation9], 1 }
 0x362   :  { %421 = vsyncpa [#allocation12], 1 }
 0x363   :  { %422 = vsyncpa [#allocation4], 1 }

</bundles_post_ra>
